<compile_context>
chip_gen: v7x
topology: tpu7x:2x2x1
jax: 0.10.0
libtpu: 0.0.40
codegen_flags: <defaults>
</compile_context>

<pallas_src>
import jax
import jax.numpy as jnp
from jax.experimental import pallas as pl


def _print_layer_kernel(x_hbm_ref, o_hbm_ref):
    """Identity with the output aliased to the input: nothing to do.

    Both refs live in `pl.ANY` (left in HBM); with no BlockSpec tiling Pallas
    emits no DMA, and the aliasing means the output buffer already holds the
    input data.
    """
    del x_hbm_ref, o_hbm_ref  # no data movement, no compute


def print_layer(x):
    """Pallas implementation of PrintLayer.forward: print shape, return x."""
    # Host-side print of the (static) shape — mirrors PyTorch's print(x.shape).
    # TODO(synk): under jax.jit this prints at trace time (once per compile),
    # not once per executed forward like eager PyTorch.
    print(tuple(x.shape))

    return pl.pallas_call(
        _print_layer_kernel,
        out_shape=jax.ShapeDtypeStruct(x.shape, x.dtype),
        in_specs=[pl.BlockSpec(memory_space=pl.ANY)],   # leave input in HBM
        out_specs=pl.BlockSpec(memory_space=pl.ANY),    # leave output in HBM
        input_output_aliases={0: 0},                    # output buffer == input buffer
    )(x)


if __name__ == "__main__":
    key = jax.random.PRNGKey(0)
    x = jax.random.normal(key, (2, 4, 16, 16), jnp.float32)

    # Keep an independent copy for the correctness check: the aliased output
    # may consume (donate) x's buffer.
    x_expected = jnp.copy(x)
    x_expected = jax.block_until_ready(x_expected)

    out = print_layer(x)
    out = jax.block_until_ready(out)

    # PrintLayer is identity on the data path.
    assert out.shape == x_expected.shape
    assert out.dtype == x_expected.dtype
    assert jnp.array_equal(out, x_expected), "identity pass-through mismatch"

    print("KERNEL_OK")
</pallas_src>

<mosaic_0001>
module attributes {stable_mosaic.version = 11 : i64} {
  func.func @_print_layer_kernel(%arg0: memref<2x4x16x16xf32, #tpu.memory_space<any>>, %arg1: memref<2x4x16x16xf32, #tpu.memory_space<any>>) attributes {dimension_semantics = [], scalar_prefetch = 0 : i64, scratch_operands = 0 : i64, tpu.core_type = #tpu.core_type<tc>} {
    return
  }
}

</mosaic_0001>

<bundles_post_ra>
// kernel: tpu_custom_call.1
= control target key start
LH: loop header
LB: loop body
LE: loop exit
PB: predicated region body
PF: predicated region fallthrough
CT: control target
= control target key end

     0   :  { %s16_s0 = inlined_call_operand.hbm [shape: f32[2,4,16,16], index: 0, kind: input, shape index: {}, may-alias: {0,1}]   ;;  %s17_s1 = inlined_call_operand.hbm [shape: f32[2,4,16,16], index: 1, kind: output, shape index: {}, may-alias: {0,1}]  }

</bundles_post_ra>
